<compile_context>
chip_gen: v5e
topology: v5e:2x2
jax: 0.10.0
libtpu: 0.0.40
codegen_flags: <defaults>
</compile_context>

<pallas_src>
import functools

import jax
import jax.numpy as jnp
from jax.experimental import pallas as pl
from jax.experimental.pallas import tpu as pltpu


def _round_up(x, m):
    return (x + m - 1) // m * m


def _const_spec(shape):
    """Grid-invariant operand: fetched once, single-buffered if supported."""
    index_map = lambda i, t: (0,) * len(shape)
    try:
        return pl.BlockSpec(shape, index_map, pipeline_mode=pl.Buffered(1))
    except TypeError:  # older jax without pipeline_mode kwarg
        return pl.BlockSpec(shape, index_map)


def _conv_tile(x_ref, lh_ref, rh_ref, w_ref, b_ref, t, *, ksize, dilation,
               stride, tl, l_in, n_t, pad, rhw, fold):
    """One (Cout, TL) un-normalized Conv1d tile on the MXU."""
    c_in = x_ref.shape[1]
    tls = tl * stride

    xm = x_ref[0]                                       # (Cin, TL*stride)
    if l_in < n_t * tls:
        # Ragged last block: zero the stale tail so it behaves exactly like
        # Conv1d's right zero-padding (select, not multiply -> NaN-safe).
        col = jax.lax.broadcasted_iota(jnp.int32, xm.shape, 1)
        xm = jnp.where(col < (l_in - t * tls), xm, 0.0)
    lh = lh_ref[0, 0]                                   # (Cin, max(pad,1))
    rh = rh_ref[0, 0]                                   # (Cin, max(rhw,1))

    if stride == 1:
        def tap(k):
            off = k * dilation - pad                    # static
            if off < 0:
                return jnp.concatenate([lh[:, pad + off:], xm[:, :tl + off]],
                                       axis=1)
            if off == 0:
                return xm
            return jnp.concatenate([xm[:, off:], rh[:, :off]], axis=1)
        taps = [tap(k) for k in range(ksize)]
    else:
        # TODO(synk): stride>1 lane-strided decimation is XLU-heavy; move the
        # decimation into layout/DMA if this path ever becomes hot.
        pieces = ([lh] if pad > 0 else []) + [xm] + ([rh] if rhw > 0 else [])
        xw = jnp.concatenate(pieces, axis=1) if len(pieces) > 1 else xm
        taps = [xw[:, k * dilation:k * dilation + (tl - 1) * stride + 1:stride]
                for k in range(ksize)]

    if fold:
        # Small channel counts: a single MXU matmul with a K*Cin contraction.
        xcat = jnp.concatenate(taps, axis=0) if ksize > 1 else taps[0]
        acc = jnp.dot(w_ref[...], xcat, preferred_element_type=jnp.float32)
    else:
        # Large Cin: K accumulating matmuls, much smaller live temporaries.
        acc = jnp.dot(w_ref[:, :c_in], taps[0],
                      preferred_element_type=jnp.float32)
        for k in range(1, ksize):
            acc = acc + jnp.dot(w_ref[:, k * c_in:(k + 1) * c_in], taps[k],
                                preferred_element_type=jnp.float32)
    return acc + b_ref[...]                             # (Cout, TL)


def _tile_stats(acc, t, *, tl, l_out, c_out):
    """Per-tile (count, sum, local-M2) over the valid columns, as (1,1)s."""
    zero = jnp.zeros((1, 1), jnp.float32)
    valid = jnp.minimum(tl, l_out - t * tl)                       # int32
    lane = jax.lax.broadcasted_iota(jnp.int32, acc.shape, 1)
    mask = lane < valid
    vals = jnp.where(mask, acc, 0.0)
    t_cnt = (zero + valid.astype(jnp.float32)) * float(c_out)     # (1,1)
    t_sum = zero + jnp.sum(vals)                                  # (1,1)
    t_mean = t_sum / t_cnt
    dev = jnp.where(mask, acc - t_mean, 0.0)
    t_m2 = zero + jnp.sum(dev * dev)                              # (1,1)
    return t_cnt, t_sum, t_mean, t_m2


def _fused_kernel(x_ref, lh_ref, rh_ref, w_ref, b_ref, g_ref, bt_ref, o_ref,
                  mean_ref, m2_ref, cnt_ref, *, ksize, dilation, stride, tl,
                  l_in, l_out, n_t, pad, rhw, eps, fold):
    t = pl.program_id(1)

    @pl.when(t == 0)
    def _():
        mean_ref[...] = jnp.zeros_like(mean_ref)
        m2_ref[...] = jnp.zeros_like(m2_ref)
        cnt_ref[...] = jnp.zeros_like(cnt_ref)

    acc = _conv_tile(x_ref, lh_ref, rh_ref, w_ref, b_ref, t, ksize=ksize,
                     dilation=dilation, stride=stride, tl=tl, l_in=l_in,
                     n_t=n_t, pad=pad, rhw=rhw, fold=fold)
    c_out = acc.shape[0]

    # Store the un-normalized tile into the VMEM-resident per-sample output
    # block (128-aligned lane offsets); the last tile is ragged.
    tail = l_out - (n_t - 1) * tl
    if n_t > 1:
        @pl.when(t < n_t - 1)
        def _():
            start = pl.multiple_of(t * tl, 128)
            o_ref[0, :, pl.ds(start, tl)] = acc.astype(o_ref.dtype)

    @pl.when(t == n_t - 1)
    def _():
        o_ref[0, :, (n_t - 1) * tl:l_out] = acc[:, :tail].astype(o_ref.dtype)

    # GroupNorm(1) statistics: Chan/Welford merge of per-tile partials.
    t_cnt, _, t_mean, t_m2 = _tile_stats(acc, t, tl=tl, l_out=l_out,
                                         c_out=c_out)
    n_a = cnt_ref[...]
    tot = n_a + t_cnt
    delta = t_mean - mean_ref[...]
    mean_ref[...] = mean_ref[...] + delta * (t_cnt / tot)
    m2_ref[...] = m2_ref[...] + t_m2 + (delta * delta) * (n_a * t_cnt / tot)
    cnt_ref[...] = tot

    # Last tile: fold gamma/beta with mean/var and normalize in place; the
    # whole (Cout, L_out) slab then goes to HBM exactly once.
    @pl.when(t == n_t - 1)
    def _():
        var = jnp.maximum(m2_ref[...] * (1.0 / float(c_out * l_out)), 0.0)
        inv = jax.lax.rsqrt(var + eps)                    # (1, 1)
        scale = g_ref[...] * inv                          # (Cout, 1)
        shift = bt_ref[...] - mean_ref[...] * scale       # (Cout, 1)
        y = o_ref[0].astype(jnp.float32)
        o_ref[0] = (y * scale + shift).astype(o_ref.dtype)


def _conv_stats_kernel(x_ref, lh_ref, rh_ref, w_ref, b_ref, y_ref, st_ref, *,
                       ksize, dilation, stride, tl, l_in, l_out, n_t, pad,
                       rhw, fold):
    """Two-pass fallback, pass 1: conv tile + per-tile (sum, local M2)."""
    t = pl.program_id(1)
    acc = _conv_tile(x_ref, lh_ref, rh_ref, w_ref, b_ref, t, ksize=ksize,
                     dilation=dilation, stride=stride, tl=tl, l_in=l_in,
                     n_t=n_t, pad=pad, rhw=rhw, fold=fold)
    c_out = acc.shape[0]
    y_ref[0] = acc.astype(y_ref.dtype)                   # lane-dense store

    _, t_sum, _, t_m2 = _tile_stats(acc, t, tl=tl, l_out=l_out, c_out=c_out)
    rows = jax.lax.broadcasted_iota(jnp.int32, (8, 128), 0)
    st_ref[0, 0] = jnp.where(rows == 0, t_sum,
                             jnp.where(rows == 1, t_m2, 0.0))


def _norm_kernel(y_ref, sc_ref, sh_ref, o_ref):
    """Two-pass fallback, pass 2: one fused multiply-add per element."""
    o_ref[0] = (y_ref[0] * sc_ref[0] + sh_ref[0]).astype(o_ref.dtype)


def _gather_cols(x_f, pos, l_in):
    """Gather a tiny set of columns of x (B,Cin,L) -> (B, n_t, Cin, w)."""
    b, c_in, _ = x_f.shape
    n_t, w = pos.shape
    ok = (pos >= 0) & (pos < l_in)
    safe = jnp.clip(pos, 0, l_in - 1)
    g = jnp.take(x_f, safe.reshape(-1), axis=2)           # (B, Cin, n_t*w)
    g = g.reshape(b, c_in, n_t, w)
    g = jnp.where(ok[None, None, :, :], g, 0.0)
    return jnp.transpose(g, (0, 2, 1, 3))                 # (B, n_t, Cin, w)


def dilated_conv_norm(x_ncl, weight, bias, gamma, beta, *, stride=1,
                      dilation=1, eps=1e-8, tile_l=512, two_pass=None):
    """Forward of DilatedConvNorm.

    x_ncl  : (B, Cin, L)       -- PyTorch NCL layout
    weight : (Cout, Cin, K)    -- PyTorch Conv1d weight (groups=1)
    bias   : (Cout,)
    gamma  : (Cout,)           -- GroupNorm weight
    beta   : (Cout,)           -- GroupNorm bias
    returns: (B, Cout, L_out)  -- PyTorch NCL layout
    """
    b, c_in, l_in = x_ncl.shape
    c_out, c_in_w, ksize = weight.shape
    assert c_in_w == c_in, "only groups=1 is supported here"

    pad = (ksize - 1) // 2 * dilation
    l_out = (l_in + 2 * pad - dilation * (ksize - 1) - 1) // stride + 1

    tl = _round_up(min(tile_l, _round_up(l_out, 128)), 128)
    n_t = pl.cdiv(l_out, tl)
    tls = tl * stride
    rhw = max((ksize - 1) * dilation - pad - (stride - 1), 0)
    # Documented limit: halos must stay (much) smaller than one tile.
    assert pad < tl and rhw < tls, "dilation too large for the chosen tile"

    f32 = jnp.float32
    x_f = x_ncl.astype(f32)

    # Tiny per-tile halo side tensors (replaces the full padded copy of x).
    lw, rw = max(pad, 1), max(rhw, 1)
    t_idx = jnp.arange(n_t, dtype=jnp.int32)
    lpos = t_idx[:, None] * tls - pad + jnp.arange(lw, dtype=jnp.int32)[None, :]
    rpos = (t_idx[:, None] + 1) * tls + jnp.arange(rw, dtype=jnp.int32)[None, :]
    x_lh = _gather_cols(x_f, lpos, l_in)                  # (B, n_t, Cin, lw)
    x_rh = _gather_cols(x_f, rpos, l_in)                  # (B, n_t, Cin, rw)

    # Only when the whole input is smaller than one tile, pad it up (tiny).
    if l_in < tls:
        x_f = jnp.pad(x_f, ((0, 0), (0, 0), (0, tls - l_in)))

    # Fold weight so the contraction index is k*Cin + cin.
    w_fold = jnp.transpose(weight, (0, 2, 1)).reshape(c_out, ksize * c_in)
    w_fold = w_fold.astype(f32)
    bias2 = bias.reshape(c_out, 1).astype(f32)
    gamma2 = gamma.reshape(c_out, 1).astype(f32)
    beta2 = beta.reshape(c_out, 1).astype(f32)

    fold = c_in < 256   # folded K*Cin matmul only for small channel counts
    grid = (b, n_t)
    x_spec = pl.BlockSpec((1, c_in, tls), lambda i, t: (i, 0, t))
    lh_spec = pl.BlockSpec((1, 1, c_in, lw), lambda i, t: (i, t, 0, 0))
    rh_spec = pl.BlockSpec((1, 1, c_in, rw), lambda i, t: (i, t, 0, 0))

    # Generation-aware VMEM budget (v7x: 64 MiB physical; v5e/v6e: 128 MiB).
    try:
        phys = getattr(pltpu.get_tpu_info(), "vmem_capacity_bytes",
                       128 * 1024 * 1024)
    except Exception:  # pragma: no cover - conservative default
        phys = 128 * 1024 * 1024
    vmem_limit = min(48 * 1024 * 1024, phys // 2)

    conv_flops = 2 * b * n_t * tl * ksize * c_in * c_out
    common_bytes = 4 * (b * c_in * x_f.shape[2] + b * n_t * c_in * (lw + rw)
                        + c_out * (ksize * c_in + 3))

    fused_bytes = (4 * 2 * c_out * l_out                  # resident out block
                   + 4 * 2 * c_in * (tls + lw + rw)       # double-buffered in
                   + 4 * c_out * (ksize * c_in + 3)       # constants
                   + 4 * tl * (ksize * c_in + 2 * c_out)  # taps/xcat + acc
                   + (2 << 20))
    if two_pass is None:
        two_pass = fused_bytes > vmem_limit

    if not two_pass:
        # ---- fused single pass: conv + GroupNorm without an HBM round trip.
        kern = functools.partial(_fused_kernel, ksize=ksize, dilation=dilation,
                                 stride=stride, tl=tl, l_in=l_in, l_out=l_out,
                                 n_t=n_t, pad=pad, rhw=rhw, eps=eps, fold=fold)
        out = pl.pallas_call(
            kern,
            out_shape=jax.ShapeDtypeStruct((b, c_out, l_out), x_ncl.dtype),
            grid=grid,
            in_specs=[x_spec, lh_spec, rh_spec,
                      _const_spec((c_out, ksize * c_in)),
                      _const_spec((c_out, 1)),
                      _const_spec((c_out, 1)),
                      _const_spec((c_out, 1))],
            out_specs=pl.BlockSpec((1, c_out, l_out), lambda i, t: (i, 0, 0)),
            scratch_shapes=[pltpu.VMEM((1, 1), f32)] * 3,
            compiler_params=pltpu.CompilerParams(
                dimension_semantics=("parallel", "arbitrary"),
                vmem_limit_bytes=vmem_limit),
            cost_estimate=pl.CostEstimate(
                flops=conv_flops + 3 * b * c_out * l_out, transcendentals=0,
                bytes_accessed=common_bytes + 4 * b * c_out * l_out),
        )(x_f, x_lh, x_rh, w_fold, bias2, gamma2, beta2)
        return out

    # ---- two-pass fallback (per-sample conv output too big for VMEM) ------
    lp = n_t * tl
    kern_a = functools.partial(_conv_stats_kernel, ksize=ksize,
                               dilation=dilation, stride=stride, tl=tl,
                               l_in=l_in, l_out=l_out, n_t=n_t, pad=pad,
                               rhw=rhw, fold=fold)
    y, stats = pl.pallas_call(
        kern_a,
        out_shape=(jax.ShapeDtypeStruct((b, c_out, lp), f32),
                   jax.ShapeDtypeStruct((b, n_t, 8, 128), f32)),
        grid=grid,
        in_specs=[x_spec, lh_spec, rh_spec,
                  _const_spec((c_out, ksize * c_in)),
                  _const_spec((c_out, 1))],
        out_specs=(pl.BlockSpec((1, c_out, tl), lambda i, t: (i, 0, t)),
                   pl.BlockSpec((1, 1, 8, 128), lambda i, t: (i, t, 0, 0))),
        compiler_params=pltpu.CompilerParams(
            dimension_semantics=("parallel", "parallel"),
            vmem_limit_bytes=vmem_limit),
        cost_estimate=pl.CostEstimate(
            flops=conv_flops, transcendentals=0,
            bytes_accessed=common_bytes + 4 * b * (c_out * lp + n_t * 1024)),
    )(x_f, x_lh, x_rh, w_fold, bias2)

    # Merge per-tile (count, sum, local M2) partials -> per-sample scale/shift.
    cnt_t = (jnp.minimum(tl, l_out - jnp.arange(n_t) * tl) * c_out).astype(f32)
    s_t = stats[:, :, 0, 0]                                       # (B, n_t)
    m2_t = stats[:, :, 1, 0]                                      # (B, n_t)
    tot = float(c_out * l_out)
    mean = jnp.sum(s_t, axis=1) / tot                             # (B,)
    mu_t = s_t / cnt_t[None, :]
    m2 = jnp.sum(m2_t + cnt_t[None, :] * (mu_t - mean[:, None]) ** 2, axis=1)
    inv = jax.lax.rsqrt(jnp.maximum(m2 / tot, 0.0) + eps)         # (B,)
    scale = gamma.astype(f32)[None, :] * inv[:, None]             # (B, Cout)
    shift = beta.astype(f32)[None, :] - mean[:, None] * scale

    tn = min(2048, lp)
    out = pl.pallas_call(
        _norm_kernel,
        out_shape=jax.ShapeDtypeStruct((b, c_out, lp), f32),
        grid=(b, pl.cdiv(lp, tn)),
        in_specs=[pl.BlockSpec((1, c_out, tn), lambda i, t: (i, 0, t)),
                  pl.BlockSpec((1, c_out, 1), lambda i, t: (i, 0, 0)),
                  pl.BlockSpec((1, c_out, 1), lambda i, t: (i, 0, 0))],
        out_specs=pl.BlockSpec((1, c_out, tn), lambda i, t: (i, 0, t)),
        input_output_aliases={0: 0},                 # normalize y in place
        compiler_params=pltpu.CompilerParams(
            dimension_semantics=("parallel", "parallel"),
            vmem_limit_bytes=vmem_limit),
        cost_estimate=pl.CostEstimate(
            flops=2 * b * c_out * lp, transcendentals=0,
            bytes_accessed=4 * (2 * b * c_out * lp + 4 * b * c_out)),
    )(y, scale[:, :, None], shift[:, :, None])
    return out[:, :, :l_out].astype(x_ncl.dtype)


def _reference(x_ncl, weight, bias, gamma, beta, *, stride, dilation, eps):
    """Pure-JAX reference (conv_general_dilated + GroupNorm(1))."""
    k = weight.shape[-1]
    pad = (k - 1) // 2 * dilation
    y = jax.lax.conv_general_dilated(
        x_ncl, weight, window_strides=(stride,), padding=[(pad, pad)],
        rhs_dilation=(dilation,), dimension_numbers=("NCH", "OIH", "NCH"))
    y = y + bias[None, :, None]
    mean = jnp.mean(y, axis=(1, 2), keepdims=True)
    var = jnp.mean((y - mean) ** 2, axis=(1, 2), keepdims=True)
    y = (y - mean) * jax.lax.rsqrt(var + eps)
    return y * gamma[None, :, None] + beta[None, :, None]


def _check(seed, B, c_in, c_out, k, L, stride, d, tile_l, two_pass):
    ks = jax.random.split(jax.random.fold_in(jax.random.PRNGKey(0), seed), 5)
    x = jax.random.normal(ks[0], (B, c_in, L), dtype=jnp.float32)
    w = jax.random.normal(ks[1], (c_out, c_in, k), dtype=jnp.float32) * 0.1
    bconv = jax.random.normal(ks[2], (c_out,), dtype=jnp.float32) * 0.1
    g = 1.0 + 0.1 * jax.random.normal(ks[3], (c_out,), dtype=jnp.float32)
    bt = 0.1 * jax.random.normal(ks[4], (c_out,), dtype=jnp.float32)

    fwd = jax.jit(functools.partial(dilated_conv_norm, stride=stride,
                                    dilation=d, eps=1e-8, tile_l=tile_l,
                                    two_pass=two_pass))
    out = jax.block_until_ready(fwd(x, w, bconv, g, bt))
    ref = _reference(x, w, bconv, g, bt, stride=stride, dilation=d, eps=1e-8)
    assert out.shape == ref.shape, (out.shape, ref.shape)
    assert jnp.allclose(out, ref, atol=1e-4, rtol=1e-4), \
        f"mismatch vs reference (seed={seed})"


if __name__ == "__main__":
    # 1) Small shapes matching the module defaults (fused single-pass path).
    _check(seed=0, B=2, c_in=4, c_out=8, k=3, L=16, stride=1, d=1,
           tile_l=512, two_pass=None)
    # 2) Multi-tile, dilated (d=2), ragged last tile (fused path, 3 tiles).
    _check(seed=1, B=1, c_in=8, c_out=16, k=3, L=300, stride=1, d=2,
           tile_l=128, two_pass=None)
    # 3) Same small shapes through the two-pass fallback path.
    _check(seed=2, B=2, c_in=4, c_out=8, k=3, L=16, stride=1, d=1,
           tile_l=512, two_pass=True)

    print("KERNEL_OK")
</pallas_src>

<mosaic_0001>
module attributes {stable_mosaic.version = 11 : i64} {
  func.func @_fused_kernel(%arg0: i32, %arg1: i32, %arg2: memref<1x4x128xf32, #tpu.memory_space<vmem>>, %arg3: memref<1x1x4x1xf32, #tpu.memory_space<vmem>>, %arg4: memref<1x1x4x1xf32, #tpu.memory_space<vmem>>, %arg5: memref<8x12xf32, #tpu.memory_space<vmem>>, %arg6: memref<8x1xf32, #tpu.memory_space<vmem>>, %arg7: memref<8x1xf32, #tpu.memory_space<vmem>>, %arg8: memref<8x1xf32, #tpu.memory_space<vmem>>, %arg9: memref<1x8x16xf32, #tpu.memory_space<vmem>>, %arg10: memref<1x1xf32, #tpu.memory_space<vmem>>, %arg11: memref<1x1xf32, #tpu.memory_space<vmem>>, %arg12: memref<1x1xf32, #tpu.memory_space<vmem>>) attributes {dimension_semantics = [#tpu.dimension_semantics<parallel>, #tpu.dimension_semantics<arbitrary>], iteration_bounds = array<i64: 2, 1>, scalar_prefetch = 0 : i64, scratch_operands = 3 : i64, tpu.core_type = #tpu.core_type<tc>, window_params = [{transform_indices = @transform_0, window_bounds = array<i64: 1, 4, 128>}, {transform_indices = @transform_1, window_bounds = array<i64: 1, 1, 4, 1>}, {transform_indices = @transform_2, window_bounds = array<i64: 1, 1, 4, 1>}, {pipeline_mode = #tpu.pipeline_mode<synchronous>, transform_indices = @transform_3, window_bounds = array<i64: 8, 12>}, {pipeline_mode = #tpu.pipeline_mode<synchronous>, transform_indices = @transform_4, window_bounds = array<i64: 8, 1>}, {pipeline_mode = #tpu.pipeline_mode<synchronous>, transform_indices = @transform_5, window_bounds = array<i64: 8, 1>}, {pipeline_mode = #tpu.pipeline_mode<synchronous>, transform_indices = @transform_6, window_bounds = array<i64: 8, 1>}, {transform_indices = @transform_7, window_bounds = array<i64: 1, 8, 16>}]} {
    %c0_i32 = arith.constant 0 : i32
    %0 = arith.cmpi eq, %arg1, %c0_i32 : i32
    %1 = arith.extui %0 : i1 to i32
    %c0_i32_0 = arith.constant 0 : i32
    %2 = arith.cmpi ne, %1, %c0_i32_0 : i32
    scf.if %2 {
      %cst_43 = arith.constant 0.000000e+00 : f32
      %82 = vector.broadcast %cst_43 : f32 to vector<1x1xf32>
      %c0_44 = arith.constant 0 : index
      %c0_45 = arith.constant 0 : index
      %83 = vector.load %arg10[%c0_44, %c0_45] : memref<1x1xf32, #tpu.memory_space<vmem>>, vector<1x1xf32>
      tpu.vector_store %arg10[%c0_44, %c0_45], %82 {strides = array<i32>} : memref<1x1xf32, #tpu.memory_space<vmem>>, vector<1x1xf32>,
      %cst_46 = arith.constant 0.000000e+00 : f32
      %84 = vector.broadcast %cst_46 : f32 to vector<1x1xf32>
      %c0_47 = arith.constant 0 : index
      %c0_48 = arith.constant 0 : index
      %85 = vector.load %arg11[%c0_47, %c0_48] : memref<1x1xf32, #tpu.memory_space<vmem>>, vector<1x1xf32>
      tpu.vector_store %arg11[%c0_47, %c0_48], %84 {strides = array<i32>} : memref<1x1xf32, #tpu.memory_space<vmem>>, vector<1x1xf32>,
      %cst_49 = arith.constant 0.000000e+00 : f32
      %86 = vector.broadcast %cst_49 : f32 to vector<1x1xf32>
      %c0_50 = arith.constant 0 : index
      %c0_51 = arith.constant 0 : index
      %87 = vector.load %arg12[%c0_50, %c0_51] : memref<1x1xf32, #tpu.memory_space<vmem>>, vector<1x1xf32>
      tpu.vector_store %arg12[%c0_50, %c0_51], %86 {strides = array<i32>} : memref<1x1xf32, #tpu.memory_space<vmem>>, vector<1x1xf32>,
    } else {
    }
    %c0 = arith.constant 0 : index
    %c0_1 = arith.constant 0 : index
    %c0_2 = arith.constant 0 : index
    %3 = vector.load %arg2[%c0, %c0_1, %c0_2] : memref<1x4x128xf32, #tpu.memory_space<vmem>>, vector<1x4x128xf32>
    %4 = vector.shape_cast %3 : vector<1x4x128xf32> to vector<4x128xf32>
    %5 = tpu.iota {dimensions = array<i32: 1>} : vector<4x128xi32>
    %c128_i32 = arith.constant 128 : i32
    %6 = arith.muli %arg1, %c128_i32 : i32
    %c16_i32 = arith.constant 16 : i32
    %7 = arith.subi %c16_i32, %6 : i32
    %8 = vector.broadcast %7 : i32 to vector<4x128xi32>
    %9 = arith.cmpi slt, %5, %8 : vector<4x128xi32>
    %cst = arith.constant 0.000000e+00 : f32
    %10 = vector.broadcast %cst : f32 to vector<4x128xf32>
    %11 = arith.select %9, %4, %10 : vector<4x128xi1>, vector<4x128xf32>
    %c0_3 = arith.constant 0 : index
    %c0_4 = arith.constant 0 : index
    %c0_5 = arith.constant 0 : index
    %c0_6 = arith.constant 0 : index
    %12 = vector.load %arg3[%c0_3, %c0_4, %c0_5, %c0_6] : memref<1x1x4x1xf32, #tpu.memory_space<vmem>>, vector<1x1x4x1xf32>
    %13 = vector.shape_cast %12 : vector<1x1x4x1xf32> to vector<4x1xf32>
    %c0_7 = arith.constant 0 : index
    %c0_8 = arith.constant 0 : index
    %c0_9 = arith.constant 0 : index
    %c0_10 = arith.constant 0 : index
    %14 = vector.load %arg4[%c0_7, %c0_8, %c0_9, %c0_10] : memref<1x1x4x1xf32, #tpu.memory_space<vmem>>, vector<1x1x4x1xf32>
    %15 = vector.shape_cast %14 : vector<1x1x4x1xf32> to vector<4x1xf32>
    %16 = vector.extract_strided_slice %11 {offsets = [0, 0], sizes = [4, 127], strides = [1, 1]} : vector<4x128xf32> to vector<4x127xf32>
    %17 = tpu.concatenate %13, %16 in 1 : vector<4x1xf32>, vector<4x127xf32> -> vector<4x128xf32>
    %18 = vector.extract_strided_slice %11 {offsets = [0, 1], sizes = [4, 127], strides = [1, 1]} : vector<4x128xf32> to vector<4x127xf32>
    %19 = tpu.concatenate %18, %15 in 1 : vector<4x127xf32>, vector<4x1xf32> -> vector<4x128xf32>
    %20 = tpu.concatenate %17, %11, %19 in 0 : vector<4x128xf32>, vector<4x128xf32>, vector<4x128xf32> -> vector<12x128xf32>
    %c0_11 = arith.constant 0 : index
    %c0_12 = arith.constant 0 : index
    %21 = vector.load %arg5[%c0_11, %c0_12] : memref<8x12xf32, #tpu.memory_space<vmem>>, vector<8x12xf32>
    %cst_13 = arith.constant dense<0.000000e+00> : vector<8x128xf32>
    %22 = tpu.matmul %21, %20, %cst_13 {dimension_numbers = #tpu.dot_dimension_numbers<[1], [0], [0], [1], [0, 0, 1, 1], [], []>} : vector<8x12xf32>, vector<12x128xf32>, vector<8x128xf32> -> vector<8x128xf32>
    %c0_14 = arith.constant 0 : index
    %c0_15 = arith.constant 0 : index
    %23 = vector.load %arg6[%c0_14, %c0_15] : memref<8x1xf32, #tpu.memory_space<vmem>>, vector<8x1xf32>
    %24 = vector.broadcast %23 : vector<8x1xf32> to vector<8x128xf32>
    %25 = arith.addf %22, %24 : vector<8x128xf32>
    %c0_i32_16 = arith.constant 0 : i32
    %26 = arith.cmpi eq, %arg1, %c0_i32_16 : i32
    %27 = arith.extui %26 : i1 to i32
    %c0_i32_17 = arith.constant 0 : i32
    %28 = arith.cmpi ne, %27, %c0_i32_17 : i32
    scf.if %28 {
      %82 = vector.extract_strided_slice %25 {offsets = [0, 0], sizes = [8, 16], strides = [1, 1]} : vector<8x128xf32> to vector<8x16xf32>
      %c0_43 = arith.constant 0 : index
      %c0_44 = arith.constant 0 : index
      %c0_45 = arith.constant 0 : index
      %83 = vector.load %arg9[%c0_43, %c0_44, %c0_45] : memref<1x8x16xf32, #tpu.memory_space<vmem>>, vector<1x8x16xf32>
      %84 = vector.shape_cast %83 : vector<1x8x16xf32> to vector<8x16xf32>
      %85 = vector.shape_cast %82 : vector<8x16xf32> to vector<1x8x16xf32>
      tpu.vector_store %arg9[%c0_43, %c0_44, %c0_45], %85 {strides = array<i32>} : memref<1x8x16xf32, #tpu.memory_space<vmem>>, vector<1x8x16xf32>,
    } else {
    }
    %cst_18 = arith.constant 0.000000e+00 : f32
    %29 = vector.broadcast %cst_18 : f32 to vector<1x1xf32>
    %c128_i32_19 = arith.constant 128 : i32
    %30 = arith.muli %arg1, %c128_i32_19 : i32
    %c16_i32_20 = arith.constant 16 : i32
    %31 = arith.subi %c16_i32_20, %30 : i32
    %c128_i32_21 = arith.constant 128 : i32
    %32 = arith.minsi %c128_i32_21, %31 : i32
    %33 = tpu.iota {dimensions = array<i32: 1>} : vector<8x128xi32>
    %34 = vector.broadcast %32 : i32 to vector<8x128xi32>
    %35 = arith.cmpi slt, %33, %34 : vector<8x128xi32>
    %cst_22 = arith.constant 0.000000e+00 : f32
    %36 = vector.broadcast %cst_22 : f32 to vector<8x128xf32>
    %37 = arith.select %35, %25, %36 : vector<8x128xi1>, vector<8x128xf32>
    %38 = arith.sitofp %32 : i32 to f32
    %39 = vector.broadcast %38 : f32 to vector<1x1xf32>
    %40 = arith.addf %29, %39 : vector<1x1xf32>
    %cst_23 = arith.constant 8.000000e+00 : f32
    %41 = vector.broadcast %cst_23 : f32 to vector<1x1xf32>
    %42 = arith.mulf %40, %41 : vector<1x1xf32>
    %43 = vector.shape_cast %37 : vector<8x128xf32> to vector<1x8x128xf32>
    %cst_24 = arith.constant dense<0.000000e+00> : vector<1xf32>
    %44 = vector.multi_reduction <add>, %43, %cst_24 [1, 2] : vector<1x8x128xf32> to vector<1xf32>
    %45 = vector.shape_cast %44 : vector<1xf32> to vector<1x1x1xf32>
    %46 = vector.extract %45[0, 0, 0] : f32 from vector<1x1x1xf32>
    %47 = vector.broadcast %46 : f32 to vector<1x1xf32>
    %48 = arith.addf %29, %47 : vector<1x1xf32>
    %49 = arith.divf %48, %42 : vector<1x1xf32>
    %50 = vector.broadcast %49 : vector<1x1xf32> to vector<8x128xf32>
    %51 = arith.subf %25, %50 : vector<8x128xf32>
    %cst_25 = arith.constant 0.000000e+00 : f32
    %52 = vector.broadcast %cst_25 : f32 to vector<8x128xf32>
    %53 = arith.select %35, %51, %52 : vector<8x128xi1>, vector<8x128xf32>
    %54 = arith.mulf %53, %53 : vector<8x128xf32>
    %55 = vector.shape_cast %54 : vector<8x128xf32> to vector<1x8x128xf32>
    %cst_26 = arith.constant dense<0.000000e+00> : vector<1xf32>
    %56 = vector.multi_reduction <add>, %55, %cst_26 [1, 2] : vector<1x8x128xf32> to vector<1xf32>
    %57 = vector.shape_cast %56 : vector<1xf32> to vector<1x1x1xf32>
    %58 = vector.extract %57[0, 0, 0] : f32 from vector<1x1x1xf32>
    %59 = vector.broadcast %58 : f32 to vector<1x1xf32>
    %60 = arith.addf %29, %59 : vector<1x1xf32>
    %c0_27 = arith.constant 0 : index
    %c0_28 = arith.constant 0 : index
    %61 = vector.load %arg12[%c0_27, %c0_28] : memref<1x1xf32, #tpu.memory_space<vmem>>, vector<1x1xf32>
    %62 = arith.addf %61, %42 : vector<1x1xf32>
    %c0_29 = arith.constant 0 : index
    %c0_30 = arith.constant 0 : index
    %63 = vector.load %arg10[%c0_29, %c0_30] : memref<1x1xf32, #tpu.memory_space<vmem>>, vector<1x1xf32>
    %64 = arith.subf %49, %63 : vector<1x1xf32>
    %c0_31 = arith.constant 0 : index
    %c0_32 = arith.constant 0 : index
    %65 = vector.load %arg10[%c0_31, %c0_32] : memref<1x1xf32, #tpu.memory_space<vmem>>, vector<1x1xf32>
    %66 = arith.divf %42, %62 : vector<1x1xf32>
    %67 = arith.mulf %64, %66 : vector<1x1xf32>
    %68 = arith.addf %65, %67 : vector<1x1xf32>
    %c0_33 = arith.constant 0 : index
    %c0_34 = arith.constant 0 : index
    %69 = vector.load %arg10[%c0_33, %c0_34] : memref<1x1xf32, #tpu.memory_space<vmem>>, vector<1x1xf32>
    tpu.vector_store %arg10[%c0_33, %c0_34], %68 {strides = array<i32>} : memref<1x1xf32, #tpu.memory_space<vmem>>, vector<1x1xf32>,
    %c0_35 = arith.constant 0 : index
    %c0_36 = arith.constant 0 : index
    %70 = vector.load %arg11[%c0_35, %c0_36] : memref<1x1xf32, #tpu.memory_space<vmem>>, vector<1x1xf32>
    %71 = arith.addf %70, %60 : vector<1x1xf32>
    %72 = arith.mulf %64, %64 : vector<1x1xf32>
    %73 = arith.mulf %61, %42 : vector<1x1xf32>
    %74 = arith.divf %73, %62 : vector<1x1xf32>
    %75 = arith.mulf %72, %74 : vector<1x1xf32>
    %76 = arith.addf %71, %75 : vector<1x1xf32>
    %c0_37 = arith.constant 0 : index
    %c0_38 = arith.constant 0 : index
    %77 = vector.load %arg11[%c0_37, %c0_38] : memref<1x1xf32, #tpu.memory_space<vmem>>, vector<1x1xf32>
    tpu.vector_store %arg11[%c0_37, %c0_38], %76 {strides = array<i32>} : memref<1x1xf32, #tpu.memory_space<vmem>>, vector<1x1xf32>,
    %c0_39 = arith.constant 0 : index
    %c0_40 = arith.constant 0 : index
    %78 = vector.load %arg12[%c0_39, %c0_40] : memref<1x1xf32, #tpu.memory_space<vmem>>, vector<1x1xf32>
    tpu.vector_store %arg12[%c0_39, %c0_40], %62 {strides = array<i32>} : memref<1x1xf32, #tpu.memory_space<vmem>>, vector<1x1xf32>,
    %c0_i32_41 = arith.constant 0 : i32
    %79 = arith.cmpi eq, %arg1, %c0_i32_41 : i32
    %80 = arith.extui %79 : i1 to i32
    %c0_i32_42 = arith.constant 0 : i32
    %81 = arith.cmpi ne, %80, %c0_i32_42 : i32
    scf.if %81 {
      %c0_43 = arith.constant 0 : index
      %c0_44 = arith.constant 0 : index
      %82 = vector.load %arg11[%c0_43, %c0_44] : memref<1x1xf32, #tpu.memory_space<vmem>>, vector<1x1xf32>
      %cst_45 = arith.constant 7.812500e-03 : f32
      %83 = vector.broadcast %cst_45 : f32 to vector<1x1xf32>
      %84 = arith.mulf %82, %83 : vector<1x1xf32>
      %cst_46 = arith.constant 0.000000e+00 : f32
      %85 = vector.broadcast %cst_46 : f32 to vector<1x1xf32>
      %86 = arith.maximumf %84, %85 : vector<1x1xf32>
      %cst_47 = arith.constant 9.99999993E-9 : f32
      %87 = vector.broadcast %cst_47 : f32 to vector<1x1xf32>
      %88 = arith.addf %86, %87 : vector<1x1xf32>
      %89 = math.rsqrt %88 : vector<1x1xf32>
      %c0_48 = arith.constant 0 : index
      %c0_49 = arith.constant 0 : index
      %90 = vector.load %arg7[%c0_48, %c0_49] : memref<8x1xf32, #tpu.memory_space<vmem>>, vector<8x1xf32>
      %91 = vector.broadcast %89 : vector<1x1xf32> to vector<8x1xf32>
      %92 = arith.mulf %90, %91 : vector<8x1xf32>
      %c0_50 = arith.constant 0 : index
      %c0_51 = arith.constant 0 : index
      %93 = vector.load %arg8[%c0_50, %c0_51] : memref<8x1xf32, #tpu.memory_space<vmem>>, vector<8x1xf32>
      %c0_52 = arith.constant 0 : index
      %c0_53 = arith.constant 0 : index
      %94 = vector.load %arg10[%c0_52, %c0_53] : memref<1x1xf32, #tpu.memory_space<vmem>>, vector<1x1xf32>
      %95 = vector.broadcast %94 : vector<1x1xf32> to vector<8x1xf32>
      %96 = arith.mulf %95, %92 : vector<8x1xf32>
      %97 = arith.subf %93, %96 : vector<8x1xf32>
      %c0_54 = arith.constant 0 : index
      %c0_55 = arith.constant 0 : index
      %c0_56 = arith.constant 0 : index
      %98 = vector.load %arg9[%c0_54, %c0_55, %c0_56] : memref<1x8x16xf32, #tpu.memory_space<vmem>>, vector<1x8x16xf32>
      %99 = vector.shape_cast %98 : vector<1x8x16xf32> to vector<8x16xf32>
      %100 = vector.broadcast %92 : vector<8x1xf32> to vector<8x16xf32>
      %101 = arith.mulf %99, %100 : vector<8x16xf32>
      %102 = vector.broadcast %97 : vector<8x1xf32> to vector<8x16xf32>
      %103 = arith.addf %101, %102 : vector<8x16xf32>
      %c0_57 = arith.constant 0 : index
      %c0_58 = arith.constant 0 : index
      %c0_59 = arith.constant 0 : index
      %104 = vector.load %arg9[%c0_57, %c0_58, %c0_59] : memref<1x8x16xf32, #tpu.memory_space<vmem>>, vector<1x8x16xf32>
      %105 = vector.shape_cast %104 : vector<1x8x16xf32> to vector<8x16xf32>
      %106 = vector.shape_cast %103 : vector<8x16xf32> to vector<1x8x16xf32>
      tpu.vector_store %arg9[%c0_57, %c0_58, %c0_59], %106 {strides = array<i32>} : memref<1x8x16xf32, #tpu.memory_space<vmem>>, vector<1x8x16xf32>,
    } else {
    }
    return
  }
  func.func @transform_0(%arg0: i32, %arg1: i32) -> (i32, i32, i32) {
    %c0_i32 = arith.constant 0 : i32
    %c0_i32_0 = arith.constant 0 : i32
    return %arg0, %c0_i32, %arg1 : i32, i32, i32
  }
  func.func @transform_1(%arg0: i32, %arg1: i32) -> (i32, i32, i32, i32) {
    %c0_i32 = arith.constant 0 : i32
    %c0_i32_0 = arith.constant 0 : i32
    %c0_i32_1 = arith.constant 0 : i32
    return %arg0, %arg1, %c0_i32, %c0_i32_0 : i32, i32, i32, i32
  }
  func.func @transform_2(%arg0: i32, %arg1: i32) -> (i32, i32, i32, i32) {
    %c0_i32 = arith.constant 0 : i32
    %c0_i32_0 = arith.constant 0 : i32
    %c0_i32_1 = arith.constant 0 : i32
    return %arg0, %arg1, %c0_i32, %c0_i32_0 : i32, i32, i32, i32
  }
  func.func @transform_3(%arg0: i32, %arg1: i32) -> (i32, i32) {
    %c0_i32 = arith.constant 0 : i32
    %c0_i32_0 = arith.constant 0 : i32
    %c0_i32_1 = arith.constant 0 : i32
    return %c0_i32, %c0_i32_0 : i32, i32
  }
  func.func @transform_4(%arg0: i32, %arg1: i32) -> (i32, i32) {
    %c0_i32 = arith.constant 0 : i32
    %c0_i32_0 = arith.constant 0 : i32
    %c0_i32_1 = arith.constant 0 : i32
    return %c0_i32, %c0_i32_0 : i32, i32
  }
  func.func @transform_5(%arg0: i32, %arg1: i32) -> (i32, i32) {
    %c0_i32 = arith.constant 0 : i32
    %c0_i32_0 = arith.constant 0 : i32
    %c0_i32_1 = arith.constant 0 : i32
    return %c0_i32, %c0_i32_0 : i32, i32
  }
  func.func @transform_6(%arg0: i32, %arg1: i32) -> (i32, i32) {
    %c0_i32 = arith.constant 0 : i32
    %c0_i32_0 = arith.constant 0 : i32
    %c0_i32_1 = arith.constant 0 : i32
    return %c0_i32, %c0_i32_0 : i32, i32
  }
  func.func @transform_7(%arg0: i32, %arg1: i32) -> (i32, i32, i32) {
    %c0_i32 = arith.constant 0 : i32
    %c0_i32_0 = arith.constant 0 : i32
    %c0_i32_1 = arith.constant 0 : i32
    return %arg0, %c0_i32, %c0_i32_0 : i32, i32, i32
  }
}

</mosaic_0001>

<bundles_post_ra>
// kernel: dilated_conv_norm.1
= control target key start
LH: loop header
LB: loop body
LE: loop exit
PB: predicated region body
PF: predicated region fallthrough
CT: control target
= control target key end

     0   :  { %12 = vsyncpa [#allocation6], 0  ;;  %s1025_s0 = inlined_call_operand.vmem [shape: f32[2,4,128], index: 0, kind: input, shape index: {}]   ;;  %s1026_s1 = inlined_call_operand.vmem [shape: f32[2,1,4,1], index: 1, kind: input, shape index: {}, may-alias: {1,2}]   ;;  %s1027_s2 = inlined_call_operand.vmem [shape: f32[2,1,4,1], index: 2, kind: input, shape index: {}, may-alias: {1,2}]   ;;  %s1028_s3 = inlined_call_operand.vmem [shape: f32[8,12], index: 3, kind: input, shape index: {}]   ;;  %s1029_s4 = inlined_call_operand.vmem [shape: f32[8,1], index: 4, kind: input, shape index: {}]   ;;  %s1030_s5 = inlined_call_operand.vmem [shape: f32[8,1], index: 5, kind: input, shape index: {}]   ;;  %s1031_s6 = inlined_call_operand.vmem [shape: f32[8,1], index: 6, kind: input, shape index: {}]   ;;  %s1032_s7 = inlined_call_operand.hbm [shape: f32[2,8,16], index: 7, kind: output, shape index: {}]  }
   0x1   :  { %14 = vsyncpa [#allocation6 + $0x1], 0  ;;  %s883_s24 = smov 0   ;;  %s885_s25 = smov 0  }
   0x2   :  { %s887_s26 = smov 0   ;;  %s889_s27 = smov 0  }
   0x3   :  { %s891_s28 = smov 0   ;;  %s893_s29 = smov 0  }
   0x4 LB: > { %s670_s30 = sadd.s32 4294967295, %s836_s29   ;;  %s671_s8 = sadd.s32 4294967294, %s836_s29   ;;  %s836_s29 = sphi %s893_s29, %s20_s29   ;;  %s832_s28 = sphi %s891_s28, %s1039_s28   ;;  %s828_s27 = sphi %s889_s27, %s1038_s27   ;;  %s824_s26 = sphi %s887_s26, %s1037_s26   ;;  %s820_s25 = sphi %s885_s25, %s1036_s25   ;;  %s816_s24 = sphi %s883_s24, %s1035_s24  }
   0x5   : > { %s32_s9 = sadd.s32 1, %s832_s28  ;;  %s207_s10 = sadd.s32 1, %s824_s26 }
   0x6   : > { %p34_p0 = scmp.ge.s32.totalorder %s32_s9, 2  ;;  %p217_p1 = scmp.ne.s32.totalorder %s824_s26, %s820_s25 }
   0x7   : > { %p218_p2 = scmp.eq.s32.totalorder %s670_s30, 1  ;;  %p223_p3 = scmp.ne.s32.totalorder %s820_s25, %s816_s24 }
   0x8   : > { %s1041_s9 = smov (%p34_p0, %s32_s9), 0  ;;  %p224_p5 = scmp.eq.s32.totalorder %s671_s8, 1 }
   0x9   : > { %p923_p4 = por %p218_p2, %p217_p1  ;;  %s204_s12 = ssub.s32 %s832_s28, %s1041_s9 }
   0xa   : > { %p674_p6 = scmp.ge.s32.totalorder %s836_s29, 1  ;;  %p205_p7 = scmp.eq.s32.totalorder %s204_s12, 0 }
   0xb   : > { %p930_p8 = por %p224_p5, %p223_p3  ;;  %p284_p9 = scmp.lt.s32.totalorder %s836_s29, 3 }
   0xc   : > { %s936_s14 = scalar_select %p205_p7, %s824_s26, %s207_s10  }
   0xd   : > { %p285_p10 = pnand %p674_p6, %p284_p9 }
   0xe   : > { %p332_p11 = scmp.lt.s32.totalorder (!%p285_p10), %s828_s27, 1  ;;  %s838_s20 = smov (!%p285_p10), 127  }
   0xf   : > { %288 = sbr.rel (%p285_p10) target bundleno = 811 (0x32b), region = 48  ;;  %s839_s21 = smov (!%p285_p10), 1  }
  0x10   : > { %s778_s12 = scalar_lea.hbm (!%p285_p10), %s1032_s7, 16 }
  0x14   : > { %v362_v0 = vlaneseq  ;;  %s333_s15 = scalar_select %p332_p11, %s828_s27, 1  ;;  %v391_v5 = vld [vmem:[%s1029_s4] sm:$0xff]  ;;  %v840_v6 = vmov 0   ;;  %vm375_vm1 = vcmask 7168   ;;  %vm388_vm2 = vcmask 1043456  }
  0x15   : > { %749 = vset.pattern.permute.xlu1 %v840_v6  ;;  %750 = vset.pattern.permute.xlu0 %v840_v6  ;;  %vm384_vm3 = vcmask 1039360   ;;  %v390_v15 = vld [vmem:[%s1028_s3] sm:$0xff]  ;;  %vm397_vm4 = vcmask 97280   ;;  %vm427_vm5 = vcmask 130048   ;;  %vm357_vm6 = vcmask 0  }
  0x16   : > { %v940_v1 = vand.u32 127, %v362_v0  ;;  %s676_s16 = sshll.u32 %s333_s15, 2  ;;  %v841_v20 = vmov 0.0   ;;  %v842_v41 = vmov 128.0   ;;  %s682_s15 = sshll.u32 %s828_s27, 3 }
  0x17   : > { %s338_s19 = scalar_lea.vmem %s1025_s0, %s676_s16  ;;  %s352_s30 = scalar_lea.vmem %s1027_s2, %s676_s16  ;;  %358 = vst.msk [vmem:[#allocation2] sm:$0x1] %vm357_vm6, %v841_v20 }
  0x18   : > { %vm367_vm0 = vcmp.lt.s32.totalorder %v940_v1, 16  ;;  %v361_v2 = vld [vmem:[%s338_s19] sm:$0xf]  ;;  %s345_s17 = scalar_lea.vmem %s1026_s1, %s676_s16  ;;  %s329_s16 = sand.u32 1, %s820_s25   ;;  %360 = vst.msk [vmem:[#allocation4] sm:$0x1] %vm357_vm6, %v841_v20 }
  0x19   : > { %v368_v3 = vsel %vm367_vm0, %v361_v2, 0.0  ;;  %v370_v4 = vld [vmem:[%s352_s30] sm:$0xf]  ;;  %359 = vst.msk [vmem:[#allocation3] sm:$0x1] %vm357_vm6, %v841_v20  ;;  %s565_s19 = scalar_lea.hbm %s1032_s7, %s682_s15 }
  0x1a   : > { %377 = vrot.lane.b32.xlu0 %v368_v3, %s838_s20  ;;  %372 = vrot.lane.b32.xlu1 %v368_v3, %s839_s21  ;;  %v386_v7 = vrot.slane %v368_v3, 4  ;;  %v369_v8 = vld [vmem:[%s345_s17] sm:$0xf] }
  0x1e   : > { %v480_v50 = vld [vmem:[#allocation2] sm:$0x1] }
  0x1f   : > { %v478_v28 = vld [vmem:[#allocation4] sm:$0x1] }
  0x20   : > { %v479_v29 = vadd.f32 128.0, %v478_v28  ;;  %v504_v39 = vmul.f32 128.0, %v478_v28 }
  0x22   : > { %381 = vrot.lane.b32.xlu0 %v370_v4, %s838_s20  ;;  %394 = vperm.xlu1 %749, %v391_v5   ;;  %s675_s20 = sshll.u32 %s329_s16, 3  ;;  %752 = vrcp.f32 %v479_v29  ;;  %509 = vst.msk [vmem:[#allocation4] sm:$0x1] %vm357_vm6, %v479_v29  ;;  %v493_v34 = vand.u32 2147483648, %v479_v29  ;;  %vm487_vm7 = vweird.f32 %v479_v29  ;;  %v491_v36 = vand.u32 2147483647, %v479_v29 }
  0x23   : > { %s965_s21 = scalar_lea.vmem [#allocation5], %s675_s20  ;;  %754 = vrcp.f32 %v842_v41  ;;  %v501_v5 = vld [vmem:[#allocation3] sm:$0x1] }
  0x24   : > { %v494_v37 = vor.u32 1.1754944e-38, %v493_v34  ;;  %vm492_vm10 = vcmp.eq.f32.partialorder %v491_v36, 8.507059e+37  ;;  %s567_s20 = sshll.u32 %s965_s21, 4  ;;  %s568_s20 = int_to_ptr.vmem [resolvable:$true] %s567_s20 }
  0x28   : > { %v753_v30 = vpop.eup %752 }
  0x29   : > { %v483_v31 = vmul.f32 %v753_v30, %v479_v29  ;;  %vm488_vm8 = vweird.f32 %v753_v30  ;;  %v755_v43 = vpop.eup %754 }
  0x2a   : > { %vm489_vm9 = vmor %vm487_vm7, %vm488_vm8  ;;  %v450_v44 = vmul.f32 128.0, %v755_v43  ;;  %vm455_vm11 = vweird.f32 %v755_v43 }
  0x2b   : > { %v484_v32 = vsub.f32 1.0, %v483_v31 }
  0x2c   : > { %v451_v45 = vsub.f32 1.0, %v450_v44 }
  0x2d   : > { %v485_v33 = vmul.f32 %v753_v30, %v484_v32 }
  0x2e   : > { %v452_v46 = vmul.f32 %v755_v43, %v451_v45 }
  0x2f   : > { %v486_v35 = vadd.f32 %v753_v30, %v485_v33 }
  0x30   : > { %v453_v47 = vadd.f32 %v755_v43, %v452_v46 }
  0x31   : > { %v490_v38 = vsel %vm489_vm9, %v753_v30, %v486_v35 }
  0x32   : > { %v495_v40 = vsel %vm492_vm10, %v494_v37, %v490_v38  ;;  %v457_v48 = vsel %vm455_vm11, %v755_v43, %v453_v47 }
  0x33   : > { %v505_v42 = vmul.f32 %v504_v39, %v495_v40  ;;  %v496_v52 = vmul.f32 128.0, %v495_v40 }
  0x8c   : > { %v378_v9 = vpop.permute.xlu0 %377  ;;  %v373_v10 = vpop.permute.xlu1 %372 }
  0x8d   : > { %v376_v11 = vsel %vm375_vm1, %v369_v8, %v373_v10 }
  0x8e   : > { %v389_v12 = vsel %vm388_vm2, %v376_v11, %v386_v7 }
  0x94   : > { %v382_v13 = vpop.permute.xlu0 %381  ;;  %v395_v16 = vpop.permute.xlu1 %394 }
  0x95   : > { %v385_v14 = vsel %vm384_vm3, %v378_v9, %v382_v13 }
  0x96   : > { %679 = vmatpush.msk.msra.mxu0 %vm388_vm2, %v385_v14 }
  0x98   : > { %419 = vmatpush.msra.mxu0 %v389_v12 }
  0x99   : > { %680 = vmatmul.msk.f32.vlgmr.msra.gmra.mxu0 %vm397_vm4, %v390_v15 }
 0x116   : > { %v421_v17 = vpop.f32.mrf.mxu0 }
 0x117   : > { %v422_v18 = vadd.f32 %v421_v17, %v395_v16 }
 0x119   : > { %v433_v19 = vsel %vm367_vm0, %v422_v18, 0.0  ;;  %428 = vst.msk [vmem:[%s965_s21] sm:$0xff] %vm427_vm5, %v422_v18 }
 0x11a   : > { %438 = vadd.xlane.f32.xlu2 %v433_v19  ;;  %v527_v19 = vld [vmem:[%s1030_s5] sm:$0xff] }
 0x18d   : > { %v439_v21 = vpop.xlane.xlu2 %438 }
 0x18e   : > { %v440_v22 = vrot.slane %v439_v21, 4 }
 0x190   : > { %v441_v23 = vadd.f32 %v440_v22, %v439_v21 }
 0x192   : > { %v442_v24 = vrot.slane %v441_v23, 2 }
 0x194   : > { %v443_v25 = vadd.f32 %v442_v24, %v441_v23  ;;  %v532_v23 = vld [vmem:[%s1031_s6] sm:$0xff] }
 0x196   : > { %v444_v26 = vrot.slane %v443_v25, 1 }
 0x198   : > { %v445_v27 = vadd.f32 %v444_v26, %v443_v25 }
 0x19a   : > { %685 = vpush %v445_v27  ;;  %v539_v27 = vld [vmem:[%s965_s21] sm:$0xff] }
 0x1cb   : > { %s686_s22 = spop %685 }
 0x1cc   : > { %v447_v49 = vstv %s686_s22  ;;  %s569_s22 = sshll.u32 %s565_s19, 4  ;;  %s570_s22 = int_to_ptr.hbm [resolvable:$true] %s569_s22 }
 0x1cd   : > { %v463_v51 = vmul.f32 %v457_v48, %v447_v49  ;;  %s772_s30 = sshra.s32 %s570_s22, 4  ;;  %s773_s30 = int_to_ptr.hbm [resolvable:$true] %s772_s30 }
 0x1ce   : > { %s774_s27 = scalar_lea.hbm %s773_s30, 8  ;;  %p779_p1 = scmp.lt.s32.totalorder %s773_s30, %s1032_s7 }
 0x1cf   : > { %v464_v53 = vsub.f32 %v422_v18, %v463_v51  ;;  %v481_v54 = vsub.f32 %v463_v51, %v480_v50  ;;  %p775_p12 = scmp.ne.s32.totalorder %s773_s30, %s774_s27  ;;  %p780_p2 = scmp.lt.s32.totalorder %s778_s12, %s774_s27 }
 0x1d1   : > { %v497_v55 = vmul.f32 %v496_v52, %v481_v54  ;;  %v503_v56 = vmul.f32 %v481_v54, %v481_v54  ;;  %v465_v57 = vsel %vm367_vm0, %v464_v53, 0.0  ;;  %p776_p13 = pnand %p775_p12, %p923_p4  ;;  %p781_p3 = por %p780_p2, %p779_p1 }
 0x1d2   : > { %v466_v58 = vmul.f32 %v465_v57, %v465_v57 }
 0x1d3   : > { %v498_v59 = vadd.f32 %v497_v55, %v480_v50  ;;  %v506_v60 = vmul.f32 %v505_v42, %v503_v56  ;;  %p777_p0 = pneg %p776_p13 }
 0x1d4   : > { %467 = vadd.xlane.f32.xlu2 %v466_v58 }
 0x1d5   : > { %500 = vst.msk [vmem:[#allocation2] sm:$0x1] %vm357_vm6, %v498_v59  ;;  %p782_p5 = pnand %p781_p3, %p777_p0 }
 0x1dc   : > { %v751_v22 = vld [vmem:[#allocation2] ss:$0 sm:$0xff] }
 0x247   : > { %v468_v61 = vpop.xlane.xlu2 %467 }
 0x248   : > { %v469_v62 = vrot.slane %v468_v61, 4 }
 0x24a   : > { %v470_v63 = vadd.f32 %v469_v62, %v468_v61 }
 0x24c   : > { %v471_v0 = vrot.slane %v470_v63, 2 }
 0x24e   : > { %v472_v2 = vadd.f32 %v471_v0, %v470_v63 }
 0x250   : > { %v473_v3 = vrot.slane %v472_v2, 1 }
 0x252   : > { %v474_v4 = vadd.f32 %v473_v3, %v472_v2 }
 0x254   : > { %687 = vpush %v474_v4 }
 0x285   : > { %s688_s23 = spop %687 }
 0x286   : > { %v476_v6 = vstv %s688_s23  ;;  %s555_s23 = scalar_lea.sflag [#allocation6], %s329_s16 }
 0x287   : > { %v502_v7 = vadd.f32 %v501_v5, %v476_v6 }
 0x289   : > { %v507_v1 = vadd.f32 %v506_v60, %v502_v7 }
 0x28b   : > { %508 = vst.msk [vmem:[#allocation3] sm:$0x1] %vm357_vm6, %v507_v1 }
 0x292   : > { %v513_v8 = vld [vmem:[#allocation3] sm:$0x1] }
 0x293   : > { %v514_v9 = vmul.f32 0.0078125, %v513_v8 }
 0x295   : > { %v515_v10 = vmax.f32 %v514_v9, 0.0 }
 0x297   : > { %v516_v11 = vadd.f32 1e-08, %v515_v10 }
 0x299   : > { %756 = vrsqrt.f32 %v516_v11  ;;  %vm523_vm13 = vweird.f32 %v516_v11 }
 0x29f   : > { %v757_v12 = vpop.eup %756 }
 0x2a0   : > { %v518_v13 = vmul.f32 %v757_v12, %v516_v11  ;;  %vm524_vm12 = vweird.f32 %v757_v12 }
 0x2a1   : > { %vm525_vm14 = vmor %vm523_vm13, %vm524_vm12 }
 0x2a2   : > { %v519_v14 = vmul.f32 %v757_v12, %v518_v13 }
 0x2a4   : > { %v520_v15 = vmul.f32 0.5, %v519_v14 }
 0x2a6   : > { %v521_v16 = vsub.f32 1.5, %v520_v15 }
 0x2a8   : > { %v522_v17 = vmul.f32 %v757_v12, %v521_v16 }
 0x2aa   : > { %v526_v18 = vsel %vm525_vm14, %v757_v12, %v522_v17 }
 0x2ab   : > { %v529_v20 = vperm.slane %v526_v18, 0 }
 0x2ad   : > { %v531_v21 = vmul.f32 %v529_v20, %v527_v19 }
 0x2af   : > { %542 = vperm.xlu0 %750, %v531_v21   ;;  %v537_v24 = vmul.f32 %v751_v22, %v531_v21 }
 0x2b1   : > { %v538_v25 = vsub.f32 %v532_v23, %v537_v24 }
 0x2b3   : > { %548 = vperm.xlu1 %749, %v538_v25  }
 0x321   : > { %v543_v26 = vpop.permute.xlu0 %542 }
 0x322   : > { %v545_v28 = vmul.f32 %v543_v26, %v539_v27 }
 0x325   : > { %v549_v29 = vpop.permute.xlu1 %548 }
 0x326   : > { %v551_v30 = vadd.f32 %v549_v29, %v545_v28 }
 0x328   : > { %553 = vst.msk [vmem:[%s965_s21] sm:$0xff] %vm427_vm5, %v551_v30 }
 0x329   : > { %785 = shalt.err (!%p782_p5)
}
 0x32a   : > { %689 = dma.vmem_to_hbm [thread:$0]  (%p923_p4), %s568_s20, 128, %s570_s22, %s555_s23  }
 0x32b PF: > { %p695_p6 = scmp.ge.s32.totalorder %s836_s29, 2  ;;  %s581_s16 = sand.u32 1, %s816_s24  }
 0x32c   : > { %s582_s21 = scalar_lea.sflag [#allocation6], %s581_s16 }
 0x32d   : > { %p692_p7 = pnand %p695_p6, %p930_p8 }
 0x32f   : > { %p693_p9 = pneg %p692_p7 }
 0x331   : > { %811 = dma.done.wait (%p693_p9), %s582_s21, 128  }
 0x332   : > { %813 = vsyncadd (%p693_p9), %s582_s21, 4294967168  ;;  %s20_s29 = sadd.s32 1, %s836_s29   ;;  %s1035_s24 = smov %s820_s25 }
 0x333   : > { %p17_p10 = scmp.ge.s32.totalorder %s20_s29, 4   ;;  %s1036_s25 = smov %s824_s26 }
 0x334   : > { %s1037_s26 = smov %s936_s14  ;;  %s1038_s27 = smov %s832_s28 }
 0x335   : > { %s1039_s28 = smov %s1041_s9  ;;  %19 = sbr.rel (!%p17_p10) target bundleno = 4 (0x4), region = 101 }
 0x33a   :  { %588 = vsyncpa [#allocation6], 1 }
 0x33b   :  { %590 = vsyncpa [#allocation6 + $0x1], 1 }

</bundles_post_ra>
